<compile_context>
chip_gen: v5e
topology: v5e:2x2
jax: 0.10.0
libtpu: 0.0.40
codegen_flags: <defaults>
</compile_context>

<pallas_src>
import math

import jax
import jax.numpy as jnp
from jax.experimental import pallas as pl
from jax.experimental.pallas import tpu as pltpu

_BN_EPS = 1e-5     # PyTorch BatchNorm2d default
_LANES = 128


def _round_up(x, m):
    return ((x + m - 1) // m) * m


# ----------------------------------------------------------------------------
# Kernels
# ----------------------------------------------------------------------------
def _make_stem_kernel(use_mask: bool):
    """Fused: conv-as-GEMM (MXU) + bias + dropout + ReLU + frozen-BN affine."""
    if use_mask:
        def kernel(p_ref, w_ref, b_ref, sc_ref, sh_ref, m_ref, o_ref):
            x = jnp.dot(p_ref[...], w_ref[...], preferred_element_type=jnp.float32)
            x = (x + b_ref[...]) * m_ref[...]          # conv bias, then dropout (0 or 1/keep)
            x = jnp.maximum(x, 0.0)                    # relu
            o_ref[...] = (x * sc_ref[...] + sh_ref[...]).astype(o_ref.dtype)
    else:
        def kernel(p_ref, w_ref, b_ref, sc_ref, sh_ref, o_ref):
            x = jnp.dot(p_ref[...], w_ref[...], preferred_element_type=jnp.float32)
            x = jnp.maximum(x + b_ref[...], 0.0)
            o_ref[...] = (x * sc_ref[...] + sh_ref[...]).astype(o_ref.dtype)
    return kernel


def _pool_kernel(a_ref, b_ref, c_ref, d_ref, o_ref):
    """3x3 / stride-2 / pad-1 max pool from 4 stride-2 parity planes.

    a: even-row/even-col taps (+1 row/col halo), b: even/odd, c: odd/even, d: odd/odd.
    All 9 window taps are covered; everything is dense unit-stride VMEM access.
    """
    oh, ow = o_ref.shape[1], o_ref.shape[2]
    m = jnp.maximum(a_ref[0, :oh, :ow, :], a_ref[0, :oh, 1:ow + 1, :])
    m = jnp.maximum(m, jnp.maximum(a_ref[0, 1:oh + 1, :ow, :],
                                   a_ref[0, 1:oh + 1, 1:ow + 1, :]))
    m = jnp.maximum(m, jnp.maximum(b_ref[0, :oh, :, :], b_ref[0, 1:oh + 1, :, :]))
    m = jnp.maximum(m, jnp.maximum(c_ref[0, :, :ow, :], c_ref[0, :, 1:ow + 1, :]))
    o_ref[0] = jnp.maximum(m, d_ref[0])


# ----------------------------------------------------------------------------
# Wrappers (layout / padding / patch extraction glue)
# ----------------------------------------------------------------------------
def _extract_patches(x_nhwc, kh, kw, stride, pad, dtype):
    """im2col via kh*kw strided slices (graph size independent of OH*OW).

    Feature order is (ki, kj, c), matching w.reshape(KH*KW*Cin, Cout) for weights
    stored as (KH, KW, Cin, Cout).
    """
    # TODO(synk): follow-up — fold patch extraction into the Pallas pipeline (row-band
    # blocks over the padded NHWC input) to avoid materializing the im2col tensor.
    B, H, W, C = x_nhwc.shape
    oh = (H + 2 * pad - kh) // stride + 1
    ow = (W + 2 * pad - kw) // stride + 1
    xp = jnp.pad(x_nhwc.astype(dtype), ((0, 0), (pad, pad), (pad, pad), (0, 0)))
    taps = []
    for ki in range(kh):
        for kj in range(kw):
            taps.append(jax.lax.slice(
                xp, (0, ki, kj, 0),
                (B, ki + (oh - 1) * stride + 1, kj + (ow - 1) * stride + 1, C),
                (1, stride, stride, 1)))
    return jnp.concatenate(taps, axis=-1), oh, ow


def _stem_conv_block(x_nhwc, params, training, drop_p, rng,
                     tile_rows=512, matmul_dtype=jnp.bfloat16):
    """convH_0 (7x7, s2, p3, bias) + drop1 + relu + bn1(frozen), fused in one kernel."""
    B, H, W, Cin = x_nhwc.shape
    KH = KW = 7
    S, P = 2, 3
    Cout = params["w"].shape[-1]
    CP = _round_up(Cout, _LANES)                       # lane-dense (128-wide) outputs

    patches, OH, OW = _extract_patches(x_nhwc, KH, KW, S, P, matmul_dtype)
    K = KH * KW * Cin
    N = B * OH * OW
    patches = patches.reshape(N, K)

    TN = min(tile_rows, _round_up(N, 8))               # big row tile; ragged tail masked
    num_tiles = -(-N // TN)

    # Weights / per-channel vectors, zero-padded Cout -> CP (padded lanes stay 0.0).
    w2 = params["w"].reshape(K, Cout).astype(jnp.float32)
    w2 = jnp.pad(w2, ((0, 0), (0, CP - Cout))).astype(matmul_dtype)
    # Frozen BN folded into one scale/shift (no per-tile rsqrt in the kernel).
    scale = params["gamma"] * jax.lax.rsqrt(params["var"] + _BN_EPS)
    shift = params["beta"] - params["mean"] * scale
    row = lambda v: jnp.pad(v.astype(jnp.float32), (0, CP - Cout)).reshape(1, CP)
    bias_r, scale_r, shift_r = row(params["b"]), row(scale), row(shift)

    inputs = [patches, w2, bias_r, scale_r, shift_r]
    in_specs = [
        pl.BlockSpec((TN, K), lambda i: (i, 0)),       # im2col rows (bf16 DMA)
        pl.BlockSpec((K, CP), lambda i: (0, 0)),       # conv weight (resident block)
        pl.BlockSpec((1, CP), lambda i: (0, 0)),       # conv bias
        pl.BlockSpec((1, CP), lambda i: (0, 0)),       # bn scale
        pl.BlockSpec((1, CP), lambda i: (0, 0)),       # bn shift
    ]

    use_mask = bool(training) and drop_p > 0.0
    if use_mask:
        keep_prob = 1.0 - drop_p
        keep = jax.random.bernoulli(rng, keep_prob, (N, CP))
        mask = keep.astype(jnp.float32) * (1.0 / keep_prob)   # 0 or 1/keep, pre-scaled
        inputs.append(mask)
        in_specs.append(pl.BlockSpec((TN, CP), lambda i: (i, 0)))

    y = pl.pallas_call(
        _make_stem_kernel(use_mask),
        grid=(num_tiles,),
        in_specs=in_specs,
        out_specs=pl.BlockSpec((TN, CP), lambda i: (i, 0)),
        out_shape=jax.ShapeDtypeStruct((N, CP), jnp.float32),
        compiler_params=pltpu.CompilerParams(dimension_semantics=("parallel",)),
    )(*inputs)
    return y.reshape(B, OH, OW, CP)


def _maxpool_3x3_s2_p1(y_nhwc):
    """maxpoolH_0 = nn.MaxPool2d(kernel_size=3, stride=2, padding=1), C kept lane-dense."""
    B, H, W, C = y_nhwc.shape
    OH = (H - 1) // 2 + 1
    OW = (W - 1) // 2 + 1
    yp = jnp.pad(y_nhwc, ((0, 0), (1, 1), (1, 1), (0, 0)), constant_values=-jnp.inf)

    # Stride-2 parity planes: together they touch the feature map ~once
    # (vs. 9x write + 9x read for an explicit (9, N, C) window expansion).
    a = jax.lax.slice(yp, (0, 0, 0, 0), (B, 2 * OH + 1, 2 * OW + 1, C), (1, 2, 2, 1))
    b = jax.lax.slice(yp, (0, 0, 1, 0), (B, 2 * OH + 1, 2 * OW,     C), (1, 2, 2, 1))
    c = jax.lax.slice(yp, (0, 1, 0, 0), (B, 2 * OH,     2 * OW + 1, C), (1, 2, 2, 1))
    d = jax.lax.slice(yp, (0, 1, 1, 0), (B, 2 * OH,     2 * OW,     C), (1, 2, 2, 1))

    # TODO(synk): follow-up — fuse this pool into the conv kernel epilogue (row-band
    # tiling) to drop one HBM round trip of the conv output.
    out = pl.pallas_call(
        _pool_kernel,
        grid=(B,),
        in_specs=[
            pl.BlockSpec((1, OH + 1, OW + 1, C), lambda i: (i, 0, 0, 0)),
            pl.BlockSpec((1, OH + 1, OW,     C), lambda i: (i, 0, 0, 0)),
            pl.BlockSpec((1, OH,     OW + 1, C), lambda i: (i, 0, 0, 0)),
            pl.BlockSpec((1, OH,     OW,     C), lambda i: (i, 0, 0, 0)),
        ],
        out_specs=pl.BlockSpec((1, OH, OW, C), lambda i: (i, 0, 0, 0)),
        out_shape=jax.ShapeDtypeStruct((B, OH, OW, C), jnp.float32),
        compiler_params=pltpu.CompilerParams(dimension_semantics=("parallel",)),
    )(a, b, c, d)
    return out


def fractalnet_forward(x_nchw, params, rng, *, training=True, drop_p=0.3):
    """FractalNet.forward stem; input/output in PyTorch NCHW convention."""
    x = jnp.transpose(x_nchw, (0, 2, 3, 1)).astype(jnp.float32)   # NCHW -> NHWC
    x = _stem_conv_block(x, params, training, drop_p, rng)        # convH_0+drop1+relu+bn1
    x = _maxpool_3x3_s2_p1(x)                                     # maxpoolH_0 (128 lanes)
    x = x[..., :params["w"].shape[-1]]                            # drop channel padding -> 64
    # TODO(synk): the_block1..the_block4 are built from `bigblock`/`block`, constructor
    # arguments whose definitions are not part of this module; they are not translated.
    return jnp.transpose(x, (0, 3, 1, 2))                         # NHWC -> NCHW


# ----------------------------------------------------------------------------
# Deterministic parameter init (mirrors the module's __init__)
# ----------------------------------------------------------------------------
def init_params(key):
    kw, kb = jax.random.split(key)
    cout, cin, kh, kw_ = 64, 3, 7, 7
    n = kh * kw_ * cout
    # conv: normal(0, sqrt(2/n)); stored as (KH, KW, Cin, Cout) for NHWC im2col
    w = jax.random.normal(kw, (kh, kw_, cin, cout), jnp.float32) * math.sqrt(2.0 / n)
    bound = 1.0 / math.sqrt(cin * kh * kw_)
    b = jax.random.uniform(kb, (cout,), jnp.float32, -bound, bound)
    return dict(
        w=w, b=b,
        gamma=jnp.ones((cout,), jnp.float32),   # bn weight = 1
        beta=jnp.zeros((cout,), jnp.float32),   # bn bias = 0
        mean=jnp.zeros((cout,), jnp.float32),   # frozen running mean
        var=jnp.ones((cout,), jnp.float32),     # frozen running var
    )


if __name__ == "__main__":
    key = jax.random.PRNGKey(0)
    kx, kp, kd = jax.random.split(key, 3)
    x = jax.random.normal(kx, (2, 3, 16, 16), dtype=jnp.float32)  # NCHW
    params = init_params(kp)

    fwd = jax.jit(fractalnet_forward, static_argnames=("training", "drop_p"))
    out = fwd(x, params, kd, training=True, drop_p=0.3)           # istrain=True default
    out = jax.block_until_ready(out)
    assert out.shape == (2, 64, 4, 4), out.shape
    print("KERNEL_OK")
</pallas_src>

<mosaic_0001>
module attributes {stable_mosaic.version = 11 : i64} {
  func.func @kernel(%arg0: i32, %arg1: memref<128x147xbf16, #tpu.memory_space<vmem>>, %arg2: memref<147x128xbf16, #tpu.memory_space<vmem>>, %arg3: memref<1x128xf32, #tpu.memory_space<vmem>>, %arg4: memref<1x128xf32, #tpu.memory_space<vmem>>, %arg5: memref<1x128xf32, #tpu.memory_space<vmem>>, %arg6: memref<128x128xf32, #tpu.memory_space<vmem>>, %arg7: memref<128x128xf32, #tpu.memory_space<vmem>>) attributes {dimension_semantics = [#tpu.dimension_semantics<parallel>], iteration_bounds = array<i64: 1>, scalar_prefetch = 0 : i64, scratch_operands = 0 : i64, tpu.core_type = #tpu.core_type<tc>, window_params = [{transform_indices = @transform_0, window_bounds = array<i64: 128, 147>}, {pipeline_mode = #tpu.pipeline_mode<synchronous>, transform_indices = @transform_1, window_bounds = array<i64: 147, 128>}, {pipeline_mode = #tpu.pipeline_mode<synchronous>, transform_indices = @transform_2, window_bounds = array<i64: 1, 128>}, {pipeline_mode = #tpu.pipeline_mode<synchronous>, transform_indices = @transform_3, window_bounds = array<i64: 1, 128>}, {pipeline_mode = #tpu.pipeline_mode<synchronous>, transform_indices = @transform_4, window_bounds = array<i64: 1, 128>}, {transform_indices = @transform_5, window_bounds = array<i64: 128, 128>}, {transform_indices = @transform_6, window_bounds = array<i64: 128, 128>}]} {
    %c0 = arith.constant 0 : index
    %c0_0 = arith.constant 0 : index
    %0 = vector.load %arg1[%c0, %c0_0] : memref<128x147xbf16, #tpu.memory_space<vmem>>, vector<128x147xbf16>
    %c0_1 = arith.constant 0 : index
    %c0_2 = arith.constant 0 : index
    %1 = vector.load %arg2[%c0_1, %c0_2] : memref<147x128xbf16, #tpu.memory_space<vmem>>, vector<147x128xbf16>
    %cst = arith.constant dense<0.000000e+00> : vector<128x128xf32>
    %2 = tpu.matmul %0, %1, %cst {dimension_numbers = #tpu.dot_dimension_numbers<[1], [0], [0], [1], [0, 0, 1, 1], [], []>} : vector<128x147xbf16>, vector<147x128xbf16>, vector<128x128xf32> -> vector<128x128xf32>
    %c0_3 = arith.constant 0 : index
    %c0_4 = arith.constant 0 : index
    %3 = vector.load %arg3[%c0_3, %c0_4] : memref<1x128xf32, #tpu.memory_space<vmem>>, vector<1x128xf32>
    %4 = vector.broadcast %3 : vector<1x128xf32> to vector<128x128xf32>
    %5 = arith.addf %2, %4 : vector<128x128xf32>
    %c0_5 = arith.constant 0 : index
    %c0_6 = arith.constant 0 : index
    %6 = vector.load %arg6[%c0_5, %c0_6] : memref<128x128xf32, #tpu.memory_space<vmem>>, vector<128x128xf32>
    %7 = arith.mulf %5, %6 : vector<128x128xf32>
    %cst_7 = arith.constant 0.000000e+00 : f32
    %8 = vector.broadcast %cst_7 : f32 to vector<128x128xf32>
    %9 = arith.maximumf %7, %8 : vector<128x128xf32>
    %c0_8 = arith.constant 0 : index
    %c0_9 = arith.constant 0 : index
    %10 = vector.load %arg4[%c0_8, %c0_9] : memref<1x128xf32, #tpu.memory_space<vmem>>, vector<1x128xf32>
    %11 = vector.broadcast %10 : vector<1x128xf32> to vector<128x128xf32>
    %12 = arith.mulf %9, %11 : vector<128x128xf32>
    %c0_10 = arith.constant 0 : index
    %c0_11 = arith.constant 0 : index
    %13 = vector.load %arg5[%c0_10, %c0_11] : memref<1x128xf32, #tpu.memory_space<vmem>>, vector<1x128xf32>
    %14 = vector.broadcast %13 : vector<1x128xf32> to vector<128x128xf32>
    %15 = arith.addf %12, %14 : vector<128x128xf32>
    %c0_12 = arith.constant 0 : index
    %c0_13 = arith.constant 0 : index
    %16 = vector.load %arg7[%c0_12, %c0_13] : memref<128x128xf32, #tpu.memory_space<vmem>>, vector<128x128xf32>
    tpu.vector_store %arg7[%c0_12, %c0_13], %15 {strides = array<i32>} : memref<128x128xf32, #tpu.memory_space<vmem>>, vector<128x128xf32>,
    return
  }
  func.func @transform_0(%arg0: i32) -> (i32, i32) {
    %c0_i32 = arith.constant 0 : i32
    %c0_i32_0 = arith.constant 0 : i32
    return %arg0, %c0_i32 : i32, i32
  }
  func.func @transform_1(%arg0: i32) -> (i32, i32) {
    %c0_i32 = arith.constant 0 : i32
    %c0_i32_0 = arith.constant 0 : i32
    %c0_i32_1 = arith.constant 0 : i32
    return %c0_i32, %c0_i32_0 : i32, i32
  }
  func.func @transform_2(%arg0: i32) -> (i32, i32) {
    %c0_i32 = arith.constant 0 : i32
    %c0_i32_0 = arith.constant 0 : i32
    %c0_i32_1 = arith.constant 0 : i32
    return %c0_i32, %c0_i32_0 : i32, i32
  }
  func.func @transform_3(%arg0: i32) -> (i32, i32) {
    %c0_i32 = arith.constant 0 : i32
    %c0_i32_0 = arith.constant 0 : i32
    %c0_i32_1 = arith.constant 0 : i32
    return %c0_i32, %c0_i32_0 : i32, i32
  }
  func.func @transform_4(%arg0: i32) -> (i32, i32) {
    %c0_i32 = arith.constant 0 : i32
    %c0_i32_0 = arith.constant 0 : i32
    %c0_i32_1 = arith.constant 0 : i32
    return %c0_i32, %c0_i32_0 : i32, i32
  }
  func.func @transform_5(%arg0: i32) -> (i32, i32) {
    %c0_i32 = arith.constant 0 : i32
    %c0_i32_0 = arith.constant 0 : i32
    return %arg0, %c0_i32 : i32, i32
  }
  func.func @transform_6(%arg0: i32) -> (i32, i32) {
    %c0_i32 = arith.constant 0 : i32
    %c0_i32_0 = arith.constant 0 : i32
    return %arg0, %c0_i32 : i32, i32
  }
}

module attributes {stable_mosaic.version = 11 : i64} {
  func.func @_pool_kernel(%arg0: i32, %arg1: memref<1x5x5x128xf32, #tpu.memory_space<vmem>>, %arg2: memref<1x5x4x128xf32, #tpu.memory_space<vmem>>, %arg3: memref<1x4x5x128xf32, #tpu.memory_space<vmem>>, %arg4: memref<1x4x4x128xf32, #tpu.memory_space<vmem>>, %arg5: memref<1x4x4x128xf32, #tpu.memory_space<vmem>>) attributes {dimension_semantics = [#tpu.dimension_semantics<parallel>], iteration_bounds = array<i64: 2>, scalar_prefetch = 0 : i64, scratch_operands = 0 : i64, tpu.core_type = #tpu.core_type<tc>, window_params = [{transform_indices = @transform_0, window_bounds = array<i64: 1, 5, 5, 128>}, {transform_indices = @transform_1, window_bounds = array<i64: 1, 5, 4, 128>}, {transform_indices = @transform_2, window_bounds = array<i64: 1, 4, 5, 128>}, {transform_indices = @transform_3, window_bounds = array<i64: 1, 4, 4, 128>}, {transform_indices = @transform_4, window_bounds = array<i64: 1, 4, 4, 128>}]} {
    %c0 = arith.constant 0 : index
    %c0_0 = arith.constant 0 : index
    %c0_1 = arith.constant 0 : index
    %c0_2 = arith.constant 0 : index
    %0 = vector.load %arg1[%c0, %c0_0, %c0_1, %c0_2] : memref<1x5x5x128xf32, #tpu.memory_space<vmem>>, vector<1x4x4x128xf32>
    %1 = vector.shape_cast %0 : vector<1x4x4x128xf32> to vector<4x4x128xf32>
    %c0_3 = arith.constant 0 : index
    %c0_4 = arith.constant 0 : index
    %c1 = arith.constant 1 : index
    %c0_5 = arith.constant 0 : index
    %2 = vector.load %arg1[%c0_3, %c0_4, %c1, %c0_5] : memref<1x5x5x128xf32, #tpu.memory_space<vmem>>, vector<1x4x4x128xf32>
    %3 = vector.shape_cast %2 : vector<1x4x4x128xf32> to vector<4x4x128xf32>
    %4 = arith.maximumf %1, %3 : vector<4x4x128xf32>
    %c0_6 = arith.constant 0 : index
    %c1_7 = arith.constant 1 : index
    %c0_8 = arith.constant 0 : index
    %c0_9 = arith.constant 0 : index
    %5 = vector.load %arg1[%c0_6, %c1_7, %c0_8, %c0_9] : memref<1x5x5x128xf32, #tpu.memory_space<vmem>>, vector<1x4x4x128xf32>
    %6 = vector.shape_cast %5 : vector<1x4x4x128xf32> to vector<4x4x128xf32>
    %c0_10 = arith.constant 0 : index
    %c1_11 = arith.constant 1 : index
    %c1_12 = arith.constant 1 : index
    %c0_13 = arith.constant 0 : index
    %7 = vector.load %arg1[%c0_10, %c1_11, %c1_12, %c0_13] : memref<1x5x5x128xf32, #tpu.memory_space<vmem>>, vector<1x4x4x128xf32>
    %8 = vector.shape_cast %7 : vector<1x4x4x128xf32> to vector<4x4x128xf32>
    %9 = arith.maximumf %6, %8 : vector<4x4x128xf32>
    %10 = arith.maximumf %4, %9 : vector<4x4x128xf32>
    %c0_14 = arith.constant 0 : index
    %c0_15 = arith.constant 0 : index
    %c0_16 = arith.constant 0 : index
    %c0_17 = arith.constant 0 : index
    %11 = vector.load %arg2[%c0_14, %c0_15, %c0_16, %c0_17] : memref<1x5x4x128xf32, #tpu.memory_space<vmem>>, vector<1x4x4x128xf32>
    %12 = vector.shape_cast %11 : vector<1x4x4x128xf32> to vector<4x4x128xf32>
    %c0_18 = arith.constant 0 : index
    %c1_19 = arith.constant 1 : index
    %c0_20 = arith.constant 0 : index
    %c0_21 = arith.constant 0 : index
    %13 = vector.load %arg2[%c0_18, %c1_19, %c0_20, %c0_21] : memref<1x5x4x128xf32, #tpu.memory_space<vmem>>, vector<1x4x4x128xf32>
    %14 = vector.shape_cast %13 : vector<1x4x4x128xf32> to vector<4x4x128xf32>
    %15 = arith.maximumf %12, %14 : vector<4x4x128xf32>
    %16 = arith.maximumf %10, %15 : vector<4x4x128xf32>
    %c0_22 = arith.constant 0 : index
    %c0_23 = arith.constant 0 : index
    %c0_24 = arith.constant 0 : index
    %c0_25 = arith.constant 0 : index
    %17 = vector.load %arg3[%c0_22, %c0_23, %c0_24, %c0_25] : memref<1x4x5x128xf32, #tpu.memory_space<vmem>>, vector<1x4x4x128xf32>
    %18 = vector.shape_cast %17 : vector<1x4x4x128xf32> to vector<4x4x128xf32>
    %c0_26 = arith.constant 0 : index
    %c0_27 = arith.constant 0 : index
    %c1_28 = arith.constant 1 : index
    %c0_29 = arith.constant 0 : index
    %19 = vector.load %arg3[%c0_26, %c0_27, %c1_28, %c0_29] : memref<1x4x5x128xf32, #tpu.memory_space<vmem>>, vector<1x4x4x128xf32>
    %20 = vector.shape_cast %19 : vector<1x4x4x128xf32> to vector<4x4x128xf32>
    %21 = arith.maximumf %18, %20 : vector<4x4x128xf32>
    %22 = arith.maximumf %16, %21 : vector<4x4x128xf32>
    %c0_30 = arith.constant 0 : index
    %c0_31 = arith.constant 0 : index
    %c0_32 = arith.constant 0 : index
    %c0_33 = arith.constant 0 : index
    %23 = vector.load %arg4[%c0_30, %c0_31, %c0_32, %c0_33] : memref<1x4x4x128xf32, #tpu.memory_space<vmem>>, vector<1x4x4x128xf32>
    %24 = vector.shape_cast %23 : vector<1x4x4x128xf32> to vector<4x4x128xf32>
    %25 = arith.maximumf %22, %24 : vector<4x4x128xf32>
    %c0_34 = arith.constant 0 : index
    %c0_35 = arith.constant 0 : index
    %c0_36 = arith.constant 0 : index
    %c0_37 = arith.constant 0 : index
    %26 = vector.load %arg5[%c0_34, %c0_35, %c0_36, %c0_37] : memref<1x4x4x128xf32, #tpu.memory_space<vmem>>, vector<1x4x4x128xf32>
    %27 = vector.shape_cast %26 : vector<1x4x4x128xf32> to vector<4x4x128xf32>
    %28 = vector.shape_cast %25 : vector<4x4x128xf32> to vector<1x4x4x128xf32>
    tpu.vector_store %arg5[%c0_34, %c0_35, %c0_36, %c0_37], %28 {strides = array<i32>} : memref<1x4x4x128xf32, #tpu.memory_space<vmem>>, vector<1x4x4x128xf32>,
    return
  }
  func.func @transform_0(%arg0: i32) -> (i32, i32, i32, i32) {
    %c0_i32 = arith.constant 0 : i32
    %c0_i32_0 = arith.constant 0 : i32
    %c0_i32_1 = arith.constant 0 : i32
    %c0_i32_2 = arith.constant 0 : i32
    return %arg0, %c0_i32, %c0_i32_0, %c0_i32_1 : i32, i32, i32, i32
  }
  func.func @transform_1(%arg0: i32) -> (i32, i32, i32, i32) {
    %c0_i32 = arith.constant 0 : i32
    %c0_i32_0 = arith.constant 0 : i32
    %c0_i32_1 = arith.constant 0 : i32
    %c0_i32_2 = arith.constant 0 : i32
    return %arg0, %c0_i32, %c0_i32_0, %c0_i32_1 : i32, i32, i32, i32
  }
  func.func @transform_2(%arg0: i32) -> (i32, i32, i32, i32) {
    %c0_i32 = arith.constant 0 : i32
    %c0_i32_0 = arith.constant 0 : i32
    %c0_i32_1 = arith.constant 0 : i32
    %c0_i32_2 = arith.constant 0 : i32
    return %arg0, %c0_i32, %c0_i32_0, %c0_i32_1 : i32, i32, i32, i32
  }
  func.func @transform_3(%arg0: i32) -> (i32, i32, i32, i32) {
    %c0_i32 = arith.constant 0 : i32
    %c0_i32_0 = arith.constant 0 : i32
    %c0_i32_1 = arith.constant 0 : i32
    %c0_i32_2 = arith.constant 0 : i32
    return %arg0, %c0_i32, %c0_i32_0, %c0_i32_1 : i32, i32, i32, i32
  }
  func.func @transform_4(%arg0: i32) -> (i32, i32, i32, i32) {
    %c0_i32 = arith.constant 0 : i32
    %c0_i32_0 = arith.constant 0 : i32
    %c0_i32_1 = arith.constant 0 : i32
    %c0_i32_2 = arith.constant 0 : i32
    return %arg0, %c0_i32, %c0_i32_0, %c0_i32_1 : i32, i32, i32, i32
  }
}

</mosaic_0001>

<bundles_post_ra>
// kernel: fractalnet_forward.3
= control target key start
LH: loop header
LB: loop body
LE: loop exit
PB: predicated region body
PF: predicated region fallthrough
CT: control target
= control target key end

     0   :  { %s496_s15 = smov 0   ;;  %s576_s0 = inlined_call_operand.vmem [shape: f32[2,5,5,128], index: 0, kind: input, shape index: {}]   ;;  %s577_s1 = inlined_call_operand.vmem [shape: f32[2,5,4,128], index: 1, kind: input, shape index: {}]   ;;  %s578_s2 = inlined_call_operand.vmem [shape: f32[2,4,5,128], index: 2, kind: input, shape index: {}]   ;;  %s579_s3 = inlined_call_operand.vmem [shape: f32[2,4,4,128], index: 3, kind: input, shape index: {}]   ;;  %s580_s4 = inlined_call_operand.vmem [shape: f32[2,4,4,128], index: 4, kind: output, shape index: {}]  }
   0x1 LB: > { %s423_s16 = sadd.s32 4294967295, %s469_s15   ;;  %p427_p0 = scmp.ge.s32.totalorder %s469_s15, 1  ;;  %s469_s15 = sphi %s496_s15, %s14_s15  }
   0x2   : > { %p192_p1 = scmp.lt.s32.totalorder %s469_s15, 3 }
   0x4   : > { %p193_p2 = pnand %p427_p0, %p192_p1 }
   0x5   : > { %p233_p3 = scmp.lt.s32.totalorder (!%p193_p2), %s423_s16, 1 }
   0x6   : > { %196 = sbr.rel (%p193_p2) target bundleno = 36 (0x24), region = 36 }
   0xb   : > { %s582_s16 = smov (!%p233_p3, %s423_s16), 1 }
   0xc   : > { %s453_s17 = smul.u32 40, %s582_s16  ;;  %s450_s18 = sshll.u32 %s582_s16, 5 }
   0xd   : > { %s454_s19 = smul.u32 20, %s582_s16  ;;  %s512_s22 = scalar_lea.vmem %s578_s2, %s450_s18 }
   0xe   : > { %s517_s25 = scalar_lea.vmem %s576_s0, %s453_s17  ;;  %s451_s26 = sshll.u32 %s582_s16, 4  ;;  %v304_v0 = vld [vmem:[%s512_s22] sm:$0xf]  ;;  %v305_v21 = vld [vmem:[%s512_s22 + $0x8] sm:$0xf] }
   0xf   : > { %v308_v1 = vld [vmem:[%s512_s22 + $0x1] sm:$0xf]  ;;  %s525_s29 = scalar_lea.vmem %s577_s1, %s454_s19  ;;  %v436_v4 = vld [vmem:[%s517_s25 + $0x8] sm:$0xf]  ;;  %s538_s6 = scalar_lea.vmem %s579_s3, %s451_s26  ;;  %v437_v14 = vld [vmem:[%s517_s25 + $0x10] sm:$0xf] }
  0x10   : > { %v258_v2 = vld [vmem:[%s517_s25] sm:$0xf]  ;;  %v440_v6 = vld [vmem:[%s517_s25 + $0x9] sm:$0xf]  ;;  %v444_v8 = vld [vmem:[%s525_s29 + $0x4] sm:$0xf]  ;;  %v312_v18 = vmax.f32 %v304_v0, %v308_v1  ;;  %s257_s9 = scalar_lea.vmem %s580_s4, %s451_s26 }
  0x11   : > { %v262_v3 = vld [vmem:[%s517_s25 + $0x1] sm:$0xf]  ;;  %v279_v9 = vmax.f32 %v436_v4, %v440_v6  ;;  %v259_v11 = vld [vmem:[%s517_s25 + $0x8] sm:$0xf]  ;;  %v441_v15 = vld [vmem:[%s517_s25 + $0x11] sm:$0xf] }
  0x12   : > { %v266_v5 = vmax.f32 %v258_v2, %v262_v3  ;;  %v287_v7 = vld [vmem:[%s525_s29] sm:$0xf]  ;;  %v263_v12 = vld [vmem:[%s517_s25 + $0x9] sm:$0xf]  ;;  %v288_v16 = vld [vmem:[%s525_s29 + $0x4] sm:$0xf]  ;;  %v280_v19 = vmax.f32 %v437_v14, %v441_v15 }
  0x13   : > { %v296_v10 = vmax.f32 %v287_v7, %v444_v8  ;;  %v267_v13 = vmax.f32 %v259_v11, %v263_v12  ;;  %v445_v20 = vld [vmem:[%s525_s29 + $0x8] sm:$0xf]  ;;  %v320_v23 = vld [vmem:[%s538_s6] sm:$0xf]  ;;  %v260_v25 = vld [vmem:[%s517_s25 + $0x10] sm:$0xf] }
  0x14   : > { %v283_v17 = vmax.f32 %v266_v5, %v279_v9  ;;  %v309_v22 = vld [vmem:[%s512_s22 + $0x9] sm:$0xf]  ;;  %v297_v24 = vmax.f32 %v288_v16, %v445_v20  ;;  %v264_v26 = vld [vmem:[%s517_s25 + $0x11] sm:$0xf]  ;;  %v438_v31 = vld [vmem:[%s517_s25 + $0x18] sm:$0xf] }
  0x15   : > { %v284_v28 = vmax.f32 %v267_v13, %v280_v19  ;;  %v313_v29 = vmax.f32 %v305_v21, %v309_v22  ;;  %v268_v30 = vmax.f32 %v260_v25, %v264_v26  ;;  %v442_v32 = vld [vmem:[%s517_s25 + $0x19] sm:$0xf]  ;;  %v289_v33 = vld [vmem:[%s525_s29 + $0x8] sm:$0xf]  ;;  %v446_v35 = vld [vmem:[%s525_s29 + $0xc] sm:$0xf] }
  0x16   : > { %v300_v27 = vmax.f32 %v283_v17, %v296_v10  ;;  %v281_v34 = vmax.f32 %v438_v31, %v442_v32  ;;  %v306_v36 = vld [vmem:[%s512_s22 + $0x10] sm:$0xf]  ;;  %v321_v40 = vld [vmem:[%s538_s6 + $0x4] sm:$0xf]  ;;  %v298_v41 = vmax.f32 %v289_v33, %v446_v35  ;;  %v261_v42 = vld [vmem:[%s517_s25 + $0x18] sm:$0xf] }
  0x17   : > { %v310_v37 = vld [vmem:[%s512_s22 + $0x11] sm:$0xf]  ;;  %v301_v39 = vmax.f32 %v284_v28, %v297_v24  ;;  %v265_v43 = vld [vmem:[%s517_s25 + $0x19] sm:$0xf]  ;;  %v439_v47 = vld [vmem:[%s517_s25 + $0x20] sm:$0xf] }
  0x18   : > { %v316_v38 = vmax.f32 %v300_v27, %v312_v18  ;;  %v285_v44 = vmax.f32 %v268_v30, %v281_v34  ;;  %v314_v45 = vmax.f32 %v306_v36, %v310_v37  ;;  %v269_v46 = vmax.f32 %v261_v42, %v265_v43  ;;  %v443_v48 = vld [vmem:[%s517_s25 + $0x21] sm:$0xf]  ;;  %v290_v49 = vld [vmem:[%s525_s29 + $0xc] sm:$0xf]  ;;  %v447_v53 = vld [vmem:[%s525_s29 + $0x10] sm:$0xf] }
  0x19   : > { %v317_v51 = vmax.f32 %v301_v39, %v313_v29  ;;  %v282_v52 = vmax.f32 %v439_v47, %v443_v48  ;;  %v307_v54 = vld [vmem:[%s512_s22 + $0x18] sm:$0xf]  ;;  %v299_v57 = vmax.f32 %v290_v49, %v447_v53  ;;  %v322_v59 = vld [vmem:[%s538_s6 + $0x8] sm:$0xf]  ;;  %v323_v1 = vld [vmem:[%s538_s6 + $0xc] sm:$0xf] }
  0x1a   : > { %v324_v50 = vmax.f32 %v316_v38, %v320_v23  ;;  %v311_v55 = vld [vmem:[%s512_s22 + $0x19] sm:$0xf]  ;;  %v302_v56 = vmax.f32 %v285_v44, %v298_v41 }
  0x1b   : > { %v325_v58 = vmax.f32 %v317_v51, %v321_v40  ;;  %v286_v60 = vmax.f32 %v269_v46, %v282_v52  ;;  %v315_v61 = vmax.f32 %v307_v54, %v311_v55 }
  0x1c   : > { %328 = vst [vmem:[%s257_s9] sm:$0xf] %v324_v50  ;;  %v318_v62 = vmax.f32 %v302_v56, %v314_v45 }
  0x1d   : > { %329 = vst [vmem:[%s257_s9 + $0x4] sm:$0xf] %v325_v58  ;;  %v303_v63 = vmax.f32 %v286_v60, %v299_v57 }
  0x1e   : > { %v326_v0 = vmax.f32 %v318_v62, %v322_v59 }
  0x1f   : > { %v319_v2 = vmax.f32 %v303_v63, %v315_v61 }
  0x20   : > { %330 = vst [vmem:[%s257_s9 + $0x8] sm:$0xf] %v326_v0 }
  0x21   : > { %v327_v3 = vmax.f32 %v319_v2, %v323_v1 }
  0x23   : > { %331 = vst [vmem:[%s257_s9 + $0xc] sm:$0xf] %v327_v3 }
  0x24 PF: > { %s14_s15 = sadd.s32 1, %s469_s15  }
  0x25   : > { %p11_p4 = scmp.ge.s32.totalorder %s14_s15, 4  }
  0x27   :  { %13 = sbr.rel (!%p11_p4) target bundleno = 1 (0x1), region = 77 }

// kernel: fractalnet_forward.2
= control target key start
LH: loop header
LB: loop body
LE: loop exit
PB: predicated region body
PF: predicated region fallthrough
CT: control target
= control target key end

     0   :  { %vm217_vm0 = vcmask 1040384   ;;  %vm218_vm1 = vcmask 1041408   ;;  %v577_v2 = vmov 65535   ;;  %vm192_vm2 = vcmask 154624   ;;  %s915_s1 = inlined_call_operand.vmem [shape: bf16[147,128], index: 1, kind: input, shape index: {}]   ;;  %s916_s0 = inlined_call_operand.vmem [shape: bf16[128,147], index: 0, kind: input, shape index: {}]   ;;  %s917_s2 = inlined_call_operand.vmem [shape: f32[1,128], index: 2, kind: input, shape index: {}]   ;;  %s918_s3 = inlined_call_operand.vmem [shape: f32[1,128], index: 3, kind: input, shape index: {}]   ;;  %s919_s4 = inlined_call_operand.vmem [shape: f32[1,128], index: 4, kind: input, shape index: {}]   ;;  %s920_s5 = inlined_call_operand.vmem [shape: f32[128,128], index: 5, kind: input, shape index: {}]   ;;  %s921_s6 = inlined_call_operand.vmem [shape: f32[128,128], index: 6, kind: output, shape index: {}]  }
   0x1   :  { %v561_v0 = vld [vmem:[%s915_s1 + $0x38] sm:$0xff]  ;;  %v58_v1 = vld [vmem:[%s915_s1 + $0x48] sm:$0x3]  ;;  %v219_v3 = vsel %vm217_vm0, 4294967295, %v577_v2  ;;  %v560_v5 = vld [vmem:[%s915_s1 + $0x30] sm:$0xff] }
   0x2   :  { %v172_v4 = vunpack.c.l.b16 %v58_v1  ;;  %224 = vmatpush.bf16.msra.mxu0 %v561_v0  ;;  %563 = vmatpush.bf16.msra.mxu2 %v561_v0  ;;  %v220_v6 = vsel %vm218_vm1, %v219_v3, 0  ;;  %v559_v9 = vld [vmem:[%s915_s1 + $0x28] sm:$0xff]  ;;  %v562_v10 = vld [vmem:[%s915_s1 + $0x40] sm:$0xff]  ;;  %v548_v13 = vld [vmem:[%s916_s0 + $0x54] sm:$0xf] }
   0x3   :  { %v538_v11 = vld [vmem:[%s916_s0 + $0x4] sm:$0xf]  ;;  %v434_v12 = vld [vmem:[%s916_s0 + $0x8] sm:$0xf0]  ;;  %v474_v14 = vld [vmem:[%s916_s0 + $0x58] sm:$0xf0] }
   0x4   :  { %v182_v7 = vpack.c.b16 %v172_v4, %v172_v4  ;;  %v437_v15 = vor.u32 %v538_v11, %v434_v12  ;;  %v558_v16 = vld [vmem:[%s915_s1 + $0x20] sm:$0xff]  ;;  %v477_v17 = vor.u32 %v548_v13, %v474_v14  ;;  %v557_v18 = vld [vmem:[%s915_s1 + $0x18] sm:$0xff]  ;;  %v556_v19 = vld [vmem:[%s915_s1 + $0x10] sm:$0xff] }
   0x5   :  { %v555_v20 = vld [vmem:[%s915_s1 + $0x8] sm:$0xff]  ;;  %v540_v21 = vld [vmem:[%s916_s0 + $0x14] sm:$0xf]  ;;  %v442_v22 = vld [vmem:[%s916_s0 + $0x18] sm:$0xf0] }
   0x6   :  { %v222_v8 = vand.u32 %v220_v6, %v182_v7  ;;  %225 = vmatpush.bf16.msra.mxu0 %v560_v5  ;;  %564 = vmatpush.bf16.msra.mxu2 %v560_v5  ;;  %v550_v23 = vld [vmem:[%s916_s0 + $0x64] sm:$0xf]  ;;  %v482_v24 = vld [vmem:[%s916_s0 + $0x68] sm:$0xf0]  ;;  %v445_v25 = vor.u32 %v540_v21, %v442_v22  ;;  %v432_v27 = vld [vmem:[%s916_s0] sm:$0xf] }
   0x7   :  { %v554_v26 = vld [vmem:[%s915_s1] sm:$0xff]  ;;  %v539_v28 = vld [vmem:[%s916_s0 + $0x4] sm:$0xf0]  ;;  %v485_v31 = vor.u32 %v550_v23, %v482_v24  ;;  %v450_v35 = vld [vmem:[%s916_s0 + $0x28] sm:$0xf0] }
   0x8   :  { %279 = vmatpush.bf16.msra.mxu1 %v222_v8  ;;  %571 = vmatpush.bf16.msra.mxu3 %v222_v8  ;;  %v464_v29 = vld [vmem:[%s916_s0 + $0x40] sm:$0xf]  ;;  %v547_v30 = vld [vmem:[%s916_s0 + $0x44] sm:$0xf0]  ;;  %v433_v32 = vor.u32 %v539_v28, %v432_v27  ;;  %v542_v34 = vld [vmem:[%s916_s0 + $0x24] sm:$0xf] }
   0x9   :  { %v465_v33 = vor.u32 %v547_v30, %v464_v29  ;;  %v552_v36 = vld [vmem:[%s916_s0 + $0x74] sm:$0xf]  ;;  %v490_v37 = vld [vmem:[%s916_s0 + $0x78] sm:$0xf0]  ;;  %v453_v38 = vor.u32 %v542_v34, %v450_v35  ;;  %v440_v39 = vld [vmem:[%s916_s0 + $0x10] sm:$0xf] }
   0xa   :  { %226 = vmatpush.bf16.msra.mxu0 %v559_v9  ;;  %565 = vmatpush.bf16.msra.mxu2 %v559_v9  ;;  %v541_v40 = vld [vmem:[%s916_s0 + $0x14] sm:$0xf0]  ;;  %v472_v41 = vld [vmem:[%s916_s0 + $0x50] sm:$0xf]  ;;  %v493_v43 = vor.u32 %v552_v36, %v490_v37  ;;  %v544_v46 = vld [vmem:[%s916_s0 + $0x34] sm:$0xf] }
   0xb   :  { %v549_v42 = vld [vmem:[%s916_s0 + $0x54] sm:$0xf0]  ;;  %v441_v44 = vor.u32 %v541_v40, %v440_v39  ;;  %v458_v47 = vld [vmem:[%s916_s0 + $0x38] sm:$0xf0]  ;;  %v448_v49 = vld [vmem:[%s916_s0 + $0x20] sm:$0xf] }
   0xc   :  { %280 = vmatpush.bf16.msra.mxu1 %v562_v10  ;;  %572 = vmatpush.bf16.msra.mxu3 %v562_v10  ;;  %v473_v45 = vor.u32 %v549_v42, %v472_v41  ;;  %v461_v48 = vor.u32 %v544_v46, %v458_v47  ;;  %v543_v50 = vld [vmem:[%s916_s0 + $0x24] sm:$0xf0]  ;;  %v480_v51 = vld [vmem:[%s916_s0 + $0x60] sm:$0xf]  ;;  %v546_v55 = vld [vmem:[%s916_s0 + $0x44] sm:$0xf] }
   0xd   :  { %v551_v52 = vld [vmem:[%s916_s0 + $0x64] sm:$0xf0]  ;;  %v449_v53 = vor.u32 %v543_v50, %v448_v49  ;;  %v466_v56 = vld [vmem:[%s916_s0 + $0x48] sm:$0xf0]  ;;  %v456_v58 = vld [vmem:[%s916_s0 + $0x30] sm:$0xf] }
   0xe   :  { %227 = vmatpush.bf16.msra.mxu0 %v558_v16  ;;  %566 = vmatpush.bf16.msra.mxu2 %v558_v16  ;;  %v481_v54 = vor.u32 %v551_v52, %v480_v51  ;;  %v469_v57 = vor.u32 %v546_v55, %v466_v56  ;;  %v545_v59 = vld [vmem:[%s916_s0 + $0x34] sm:$0xf0]  ;;  %v488_v60 = vld [vmem:[%s916_s0 + $0x70] sm:$0xf]  ;;  %v750_v3 = vld [vmem:[%s917_s2] ss:$0 sm:$0xff] }
   0xf   :  { %530 = vmatmul.msk.bf16.vlgmr.msra.gmra.mxu1 %vm192_vm2, %v437_v15  ;;  %535 = vmatmul.msk.bf16.vlgmr.msra.gmra.mxu3 %vm192_vm2, %v477_v17  ;;  %v553_v61 = vld [vmem:[%s916_s0 + $0x74] sm:$0xf0]  ;;  %v457_v62 = vor.u32 %v545_v59, %v456_v58  ;;  %v322_v6 = vld [vmem:[%s920_s5] sm:$0xff]  ;;  %v323_v17 = vld [vmem:[%s920_s5 + $0x8] sm:$0xff] }
  0x10   :  { %v489_v63 = vor.u32 %v553_v61, %v488_v60  ;;  %v759_v9 = vld [vmem:[%s918_s3] ss:$0 sm:$0xff]  ;;  %v324_v28 = vld [vmem:[%s920_s5 + $0x10] sm:$0xff]  ;;  %v325_v42 = vld [vmem:[%s920_s5 + $0x18] sm:$0xff] }
  0x11   :  { %v764_v12 = vld [vmem:[%s919_s4] ss:$0 sm:$0xff]  ;;  %v333_v55 = vld [vmem:[%s920_s5 + $0x58] sm:$0xff] }
  0x12   :  { %228 = vmatpush.bf16.msra.mxu0 %v557_v18  ;;  %567 = vmatpush.bf16.msra.mxu2 %v557_v18  ;;  %v326_v59 = vld [vmem:[%s920_s5 + $0x20] sm:$0xff] }
  0x16   :  { %229 = vmatpush.bf16.msra.mxu0 %v556_v19  ;;  %568 = vmatpush.bf16.msra.mxu2 %v556_v19 }
  0x1a   :  { %230 = vmatpush.bf16.msra.mxu0 %v555_v20  ;;  %569 = vmatpush.bf16.msra.mxu2 %v555_v20 }
  0x1e   :  { %231 = vmatpush.bf16.msra.mxu0 %v554_v26  ;;  %570 = vmatpush.bf16.msra.mxu2 %v554_v26 }
  0x1f   :  { %531 = vmatmul.msk.bf16.gmra.mxu1 %vm192_vm2, %v445_v25  ;;  %536 = vmatmul.msk.bf16.gmra.mxu3 %vm192_vm2, %v485_v31 }
  0x21   :  { %232 = vmatmul.bf16.vlgmr.msra.gmra.mxu0 %v433_v32  ;;  %252 = vmatmul.bf16.vlgmr.msra.gmra.mxu2 %v465_v33 }
  0x2f   :  { %532 = vmatmul.msk.bf16.gmra.mxu1 %vm192_vm2, %v453_v38  ;;  %537 = vmatmul.msk.bf16.gmra.mxu3 %vm192_vm2, %v493_v43  ;;  %v332_v38 = vld [vmem:[%s920_s5 + $0x50] sm:$0xff] }
  0x31   :  { %237 = vmatmul.bf16.gmra.mxu0 %v441_v44  ;;  %257 = vmatmul.bf16.gmra.mxu2 %v473_v45 }
  0x3f   :  { %533 = vmatmul.msk.bf16.gmra.mxu1 %vm192_vm2, %v461_v48 }
  0x41   :  { %242 = vmatmul.bf16.gmra.mxu0 %v449_v53  ;;  %262 = vmatmul.bf16.gmra.mxu2 %v481_v54 }
  0x4f   :  { %534 = vmatmul.msk.bf16.gmra.mxu1 %vm192_vm2, %v469_v57 }
  0x51   :  { %247 = vmatmul.bf16.gmra.mxu0 %v457_v62  ;;  %267 = vmatmul.bf16.gmra.mxu2 %v489_v63 }
  0x8c   :  { %v282_v0 = vpop.f32.mrf.mxu1 }
  0x92   :  { %v307_v24 = vpop.f32.mrf.mxu3 }
  0x94   :  { %v284_v1 = vpop.f32.mrf.mxu1 }
  0x9a   :  { %v309_v40 = vpop.f32.mrf.mxu3 }
  0x9c   :  { %v287_v2 = vpop.f32.mrf.mxu1 }
  0x9e   :  { %v233_v4 = vpop.f32.mrf.mxu0 }
  0x9f   :  { %v234_v5 = vadd.f32 %v750_v3, %v233_v4 }
  0xa1   :  { %v283_v7 = vadd.f32 %v282_v0, %v234_v5 }
  0xa2   :  { %v312_v62 = vpop.f32.mrf.mxu3 }
  0xa3   :  { %v338_v8 = vmul.f32 %v322_v6, %v283_v7 }
  0xa4   :  { %v289_v10 = vpop.f32.mrf.mxu1  ;;  %v766_v13 = vpop.f32.mrf.mxu2 }
  0xa5   :  { %v354_v11 = vmax.f32 %v338_v8, 0.0 }
  0xa6   :  { %v235_v14 = vpop.f32.mrf.mxu0 }
  0xa7   :  { %v374_v15 = vmul.f32 %v759_v9, %v354_v11  ;;  %v236_v16 = vadd.f32 %v750_v3, %v235_v14  ;;  %v334_v11 = vld [vmem:[%s920_s5 + $0x60] sm:$0xff] }
  0xa9   :  { %v394_v18 = vadd.f32 %v764_v12, %v374_v15  ;;  %v285_v19 = vadd.f32 %v284_v1, %v236_v16 }
  0xab   :  { %410 = vst [vmem:[%s921_s6] sm:$0xff] %v394_v18  ;;  %v339_v20 = vmul.f32 %v323_v17, %v285_v19  ;;  %v327_v17 = vld [vmem:[%s920_s5 + $0x28] sm:$0xff] }
  0xac   :  { %v292_v21 = vpop.f32.mrf.mxu1  ;;  %v777_v23 = vpop.f32.mrf.mxu2 }
  0xad   :  { %v355_v22 = vmax.f32 %v339_v20, 0.0  ;;  %v254_v20 = vadd.f32 %v750_v3, %v766_v13 }
  0xae   :  { %v238_v25 = vpop.f32.mrf.mxu0 }
  0xaf   :  { %v375_v26 = vmul.f32 %v759_v9, %v355_v22  ;;  %v239_v27 = vadd.f32 %v750_v3, %v238_v25 }
  0xb1   :  { %v395_v29 = vadd.f32 %v764_v12, %v375_v26  ;;  %v288_v30 = vadd.f32 %v287_v2, %v239_v27  ;;  %v330_v26 = vld [vmem:[%s920_s5 + $0x40] sm:$0xff] }
  0xb3   :  { %411 = vst [vmem:[%s921_s6 + $0x8] sm:$0xff] %v395_v29  ;;  %v340_v31 = vmul.f32 %v324_v28, %v288_v30 }
  0xb4   :  { %v294_v32 = vpop.f32.mrf.mxu1  ;;  %v258_v34 = vpop.f32.mrf.mxu2 }
  0xb5   :  { %v356_v33 = vmax.f32 %v340_v31, 0.0  ;;  %v259_v35 = vadd.f32 %v750_v3, %v258_v34 }
  0xb6   :  { %v240_v36 = vpop.f32.mrf.mxu0 }
  0xb7   :  { %v376_v37 = vmul.f32 %v759_v9, %v356_v33  ;;  %v241_v39 = vadd.f32 %v750_v3, %v240_v36  ;;  %v308_v41 = vadd.f32 %v307_v24, %v259_v35  ;;  %v314_v24 = vpop.f32.mrf.mxu3  ;;  %v335_v35 = vld [vmem:[%s920_s5 + $0x68] sm:$0xff] }
  0xb9   :  { %v396_v43 = vadd.f32 %v764_v12, %v376_v37  ;;  %v290_v44 = vadd.f32 %v289_v10, %v241_v39  ;;  %v348_v45 = vmul.f32 %v332_v38, %v308_v41 }
  0xbb   :  { %412 = vst [vmem:[%s921_s6 + $0x10] sm:$0xff] %v396_v43  ;;  %v341_v46 = vmul.f32 %v325_v42, %v290_v44  ;;  %v364_v48 = vmax.f32 %v348_v45, 0.0  ;;  %v256_v43 = vadd.f32 %v750_v3, %v777_v23 }
  0xbc   :  { %v297_v47 = vpop.f32.mrf.mxu1  ;;  %v260_v50 = vpop.f32.mrf.mxu2 }
  0xbd   :  { %v357_v49 = vmax.f32 %v341_v46, 0.0  ;;  %v384_v51 = vmul.f32 %v759_v9, %v364_v48  ;;  %v261_v52 = vadd.f32 %v750_v3, %v260_v50 }
  0xbe   :  { %v243_v53 = vpop.f32.mrf.mxu0 }
  0xbf   :  { %v377_v54 = vmul.f32 %v759_v9, %v357_v49  ;;  %v244_v56 = vadd.f32 %v750_v3, %v243_v53  ;;  %v404_v57 = vadd.f32 %v764_v12, %v384_v51  ;;  %v310_v58 = vadd.f32 %v309_v40, %v261_v52  ;;  %v328_v40 = vld [vmem:[%s920_s5 + $0x30] sm:$0xff]  ;;  %v317_v52 = vpop.f32.mrf.mxu3 }
  0xc1   :  { %v397_v60 = vadd.f32 %v764_v12, %v377_v54  ;;  %v293_v61 = vadd.f32 %v292_v21, %v244_v56  ;;  %420 = vst [vmem:[%s921_s6 + $0x50] sm:$0xff] %v404_v57  ;;  %v349_v63 = vmul.f32 %v333_v55, %v310_v58 }
  0xc3   :  { %413 = vst [vmem:[%s921_s6 + $0x18] sm:$0xff] %v397_v60  ;;  %v342_v0 = vmul.f32 %v326_v59, %v293_v61  ;;  %v365_v2 = vmax.f32 %v349_v63, 0.0  ;;  %v336_v59 = vld [vmem:[%s920_s5 + $0x70] sm:$0xff] }
  0xc4   :  { %v819_v1 = vpop.f32.mrf.mxu1  ;;  %v263_v5 = vpop.f32.mrf.mxu2 }
  0xc5   :  { %v358_v4 = vmax.f32 %v342_v0, 0.0  ;;  %v385_v6 = vmul.f32 %v759_v9, %v365_v2  ;;  %v264_v7 = vadd.f32 %v750_v3, %v263_v5  ;;  %v329_v0 = vld [vmem:[%s920_s5 + $0x38] sm:$0xff] }
  0xc6   :  { %v245_v8 = vpop.f32.mrf.mxu0 }
  0xc7   :  { %v378_v10 = vmul.f32 %v759_v9, %v358_v4  ;;  %v246_v14 = vadd.f32 %v750_v3, %v245_v8  ;;  %v405_v15 = vadd.f32 %v764_v12, %v385_v6  ;;  %v313_v16 = vadd.f32 %v312_v62, %v264_v7 }
  0xc9   :  { %v398_v18 = vadd.f32 %v764_v12, %v378_v10  ;;  %v295_v19 = vadd.f32 %v294_v32, %v246_v14  ;;  %421 = vst [vmem:[%s921_s6 + $0x58] sm:$0xff] %v405_v15  ;;  %v350_v21 = vmul.f32 %v334_v11, %v313_v16 }
  0xcb   :  { %414 = vst [vmem:[%s921_s6 + $0x20] sm:$0xff] %v398_v18  ;;  %v343_v22 = vmul.f32 %v327_v17, %v295_v19  ;;  %v366_v27 = vmax.f32 %v350_v21, 0.0  ;;  %v319_v17 = vpop.f32.mrf.mxu3  ;;  %v337_v18 = vld [vmem:[%s920_s5 + $0x78] sm:$0xff] }
  0xcc   :  { %v302_v25 = vpop.f32.mrf.mxu1  ;;  %v265_v13 = vpop.f32.mrf.mxu2 }
  0xcd   :  { %v303_v28 = vadd.f32 %v302_v25, %v254_v20  ;;  %v359_v29 = vmax.f32 %v343_v22, 0.0  ;;  %v386_v30 = vmul.f32 %v759_v9, %v366_v27  ;;  %v266_v32 = vadd.f32 %v750_v3, %v265_v13 }
  0xce   :  { %v248_v33 = vpop.f32.mrf.mxu0 }
  0xcf   :  { %v346_v31 = vmul.f32 %v330_v26, %v303_v28  ;;  %v379_v34 = vmul.f32 %v759_v9, %v359_v29  ;;  %v249_v36 = vadd.f32 %v750_v3, %v248_v33  ;;  %v406_v37 = vadd.f32 %v764_v12, %v386_v30 }
  0xd0   :  { %v315_v39 = vadd.f32 %v314_v24, %v266_v32 }
  0xd1   :  { %v362_v38 = vmax.f32 %v346_v31, 0.0  ;;  %v399_v41 = vadd.f32 %v764_v12, %v379_v34  ;;  %v298_v42 = vadd.f32 %v297_v47, %v249_v36  ;;  %422 = vst [vmem:[%s921_s6 + $0x60] sm:$0xff] %v406_v37  ;;  %v331_v47 = vld [vmem:[%s920_s5 + $0x48] sm:$0xff] }
  0xd2   :  { %v351_v45 = vmul.f32 %v335_v35, %v315_v39 }
  0xd3   :  { %v382_v44 = vmul.f32 %v759_v9, %v362_v38  ;;  %415 = vst [vmem:[%s921_s6 + $0x28] sm:$0xff] %v399_v41  ;;  %v344_v46 = vmul.f32 %v328_v40, %v298_v42 }
  0xd4   :  { %v304_v48 = vpop.f32.mrf.mxu1  ;;  %v367_v23 = vmax.f32 %v351_v45, 0.0  ;;  %v268_v53 = vpop.f32.mrf.mxu2 }
  0xd5   :  { %v402_v49 = vadd.f32 %v764_v12, %v382_v44  ;;  %v305_v50 = vadd.f32 %v304_v48, %v256_v43  ;;  %v360_v51 = vmax.f32 %v344_v46, 0.0  ;;  %v269_v56 = vadd.f32 %v750_v3, %v268_v53 }
  0xd6   :  { %v387_v54 = vmul.f32 %v759_v9, %v367_v23  ;;  %v250_v57 = vpop.f32.mrf.mxu0 }
  0xd7   :  { %418 = vst [vmem:[%s921_s6 + $0x40] sm:$0xff] %v402_v49  ;;  %v347_v55 = vmul.f32 %v331_v47, %v305_v50  ;;  %v380_v58 = vmul.f32 %v759_v9, %v360_v51  ;;  %v251_v60 = vadd.f32 %v750_v3, %v250_v57  ;;  %v318_v63 = vadd.f32 %v317_v52, %v269_v56 }
  0xd8   :  { %v407_v61 = vadd.f32 %v764_v12, %v387_v54 }
  0xd9   :  { %v363_v62 = vmax.f32 %v347_v55, 0.0  ;;  %v400_v2 = vadd.f32 %v764_v12, %v380_v58  ;;  %v300_v4 = vadd.f32 %v819_v1, %v251_v60  ;;  %v352_v6 = vmul.f32 %v336_v59, %v318_v63 }
  0xda   :  { %423 = vst [vmem:[%s921_s6 + $0x68] sm:$0xff] %v407_v61 }
  0xdb   :  { %v383_v5 = vmul.f32 %v759_v9, %v363_v62  ;;  %416 = vst [vmem:[%s921_s6 + $0x30] sm:$0xff] %v400_v2  ;;  %v345_v7 = vmul.f32 %v329_v0, %v300_v4  ;;  %v368_v10 = vmax.f32 %v352_v6, 0.0 }
  0xdc   :  { %v270_v14 = vpop.f32.mrf.mxu2 }
  0xdd   :  { %v403_v8 = vadd.f32 %v764_v12, %v383_v5  ;;  %v361_v11 = vmax.f32 %v345_v7, 0.0  ;;  %v388_v1 = vmul.f32 %v759_v9, %v368_v10  ;;  %v271_v15 = vadd.f32 %v750_v3, %v270_v14 }
  0xdf   :  { %419 = vst [vmem:[%s921_s6 + $0x48] sm:$0xff] %v403_v8  ;;  %v381_v16 = vmul.f32 %v759_v9, %v361_v11  ;;  %v408_v19 = vadd.f32 %v764_v12, %v388_v1  ;;  %v320_v20 = vadd.f32 %v319_v17, %v271_v15 }
  0xe1   :  { %v401_v21 = vadd.f32 %v764_v12, %v381_v16  ;;  %424 = vst [vmem:[%s921_s6 + $0x70] sm:$0xff] %v408_v19  ;;  %v353_v22 = vmul.f32 %v337_v18, %v320_v20 }
  0xe3   :  { %417 = vst [vmem:[%s921_s6 + $0x38] sm:$0xff] %v401_v21  ;;  %v369_v3 = vmax.f32 %v353_v22, 0.0 }
  0xe5   :  { %v389_v24 = vmul.f32 %v759_v9, %v369_v3 }
  0xe7   :  { %v409_v25 = vadd.f32 %v764_v12, %v389_v24 }
  0xe9   :  { %425 = vst [vmem:[%s921_s6 + $0x78] sm:$0xff] %v409_v25 }

</bundles_post_ra>
